<compile_context>
chip_gen: v7x
topology: tpu7x:2x2x1
jax: 0.10.0
libtpu: 0.0.40
codegen_flags: <defaults>
</compile_context>

<pallas_src>
import functools

import jax
import jax.numpy as jnp
from jax import lax
from jax.experimental import pallas as pl
from jax.experimental.pallas import tpu as pltpu


def _round_up(x, m):
    return ((x + m - 1) // m) * m


def _vmem_capacity_bytes():
    try:
        return int(pltpu.get_tpu_info().vmem_capacity_bytes)
    except Exception:
        return 64 << 20  # conservative: v7x per-TensorCore VMEM


# --------------------- resident-table path: one-hot MXU gather ----------------------

def _embed_onehot_kernel(labels_ref, table_ref, out_ref):
    # labels_ref : VMEM (TB, 1) int32
    # table_ref  : VMEM (V, Hp)  -- full table, single-buffered, resident across grid
    # out_ref    : VMEM (TB, Hp)
    tb = out_ref.shape[0]
    v = table_ref.shape[0]

    labels = labels_ref[...]                                   # (TB, 1)
    class_ids = lax.broadcasted_iota(jnp.int32, (tb, v), 1)    # (TB, V)
    one_hot_bool = labels == class_ids                         # (TB, V) bool

    table = table_ref[...]
    if table.dtype == jnp.float32:
        # f32 MXU matmuls are emulated via bf16 passes; do an explicit 3-chunk
        # split so the one-hot gather is exact (~1 f32 ulp) regardless of the
        # backend's default matmul precision.
        one_hot = one_hot_bool.astype(jnp.bfloat16)
        hi = table.astype(jnp.bfloat16)
        r1 = table - hi.astype(jnp.float32)
        mid = r1.astype(jnp.bfloat16)
        lo = (r1 - mid.astype(jnp.float32)).astype(jnp.bfloat16)
        acc = jnp.dot(one_hot, hi, preferred_element_type=jnp.float32)
        acc = acc + jnp.dot(one_hot, mid, preferred_element_type=jnp.float32)
        acc = acc + jnp.dot(one_hot, lo, preferred_element_type=jnp.float32)
    else:
        # bf16 (etc.) tables: 0/1 one-hot is exact in the table dtype.
        one_hot = one_hot_bool.astype(table.dtype)
        acc = jnp.dot(one_hot, table, preferred_element_type=jnp.float32)

    out_ref[...] = acc.astype(out_ref.dtype)


# ------------------ fallback path: HBM row-gather (table stays in HBM) --------------

def _embed_rowdma_kernel(labels_ref, table_hbm, out_ref, sems):
    # labels_ref : SMEM (B_pad,) int32  (scalar prefetch)
    # table_hbm  : HBM  (V, H)          (memory_space=pl.ANY, no auto-DMA)
    # out_ref    : VMEM (TBF, H)
    # sems       : DMA semaphores (TBF,)
    i = pl.program_id(0)
    tb = out_ref.shape[0]
    # Start all row DMAs (HBM table row -> output VMEM row), then wait them all.
    for r in range(tb):
        lbl = labels_ref[i * tb + r]
        pltpu.make_async_copy(
            table_hbm.at[pl.ds(lbl, 1), :],
            out_ref.at[pl.ds(r, 1), :],
            sems.at[r],
        ).start()
    for r in range(tb):
        pltpu.make_async_copy(
            table_hbm.at[pl.ds(0, 1), :],     # shape-only descriptor for the wait
            out_ref.at[pl.ds(r, 1), :],
            sems.at[r],
        ).wait()


# --------------------------------------- wrapper ------------------------------------

@functools.partial(jax.jit, static_argnames=("force_path",))
def label_embed_pallas(labels, embedding_table, force_path=None):
    """Gather embedding rows for `labels`; returns (B, 1, H), like
    torch `embedding_table(labels).unsqueeze(1)`."""
    B = labels.shape[0]
    V, H = embedding_table.shape
    dtype = embedding_table.dtype
    itemsize = jnp.dtype(dtype).itemsize

    # Safety clamp (VMEM/HBM reads are not bounds-checked). Out-of-range labels
    # cannot occur through the module API (checked in __call__); this only
    # protects padded rows / defensive use.
    labels = jnp.clip(labels.astype(jnp.int32), 0, V - 1)

    vmem_cap = _vmem_capacity_bytes()

    # Dtype-aware sublane-dense batch tile, lane-dense hidden.
    sub_min = max(8, 32 // max(itemsize, 1))     # f32: 8, bf16: 16, int8: 32
    max_tb = 256
    Hp = _round_up(H, 128)

    b_sub = _round_up(B, sub_min)
    tb = b_sub if b_sub <= max_tb else max_tb    # typical DiT batches -> grid=(1,)
    b_pad = _round_up(B, tb)

    # VMEM need of the resident-table path: table single-buffered + in-kernel
    # split/one-hot temporaries + double-buffered output + labels + headroom.
    resident_need = (V * Hp * itemsize
                     + 4 * V * Hp * itemsize
                     + 2 * tb * Hp * itemsize
                     + tb * V * 4 + tb * Hp * 4
                     + 2 * tb * 4
                     + (2 << 20))

    if force_path is None:
        use_resident = resident_need <= int(0.7 * vmem_cap)
    else:
        use_resident = force_path == "resident"

    if use_resident:
        labels_p = labels
        if b_pad != B:
            labels_p = jnp.pad(labels_p, (0, b_pad - B))   # pad rows gather class 0, sliced off
        labels_2d = labels_p.reshape(b_pad, 1)
        table_p = embedding_table
        if Hp != H:
            table_p = jnp.pad(table_p, ((0, 0), (0, Hp - H)))

        vmem_limit = int(min(max(resident_need + (4 << 20), 16 << 20),
                             int(0.9 * vmem_cap)))

        grid_spec = pltpu.PrefetchScalarGridSpec(
            num_scalar_prefetch=0,
            grid=(b_pad // tb,),
            in_specs=[
                pl.BlockSpec((tb, 1), lambda i: (i, 0)),
                # Whole table, constant index_map -> fetched once, stays resident.
                # Buffered(1): don't allocate a useless second copy.
                pl.BlockSpec((V, Hp), lambda i: (0, 0),
                             pipeline_mode=pl.Buffered(1)),
            ],
            out_specs=pl.BlockSpec((tb, Hp), lambda i: (i, 0)),
        )
        out = pl.pallas_call(
            _embed_onehot_kernel,
            out_shape=jax.ShapeDtypeStruct((b_pad, Hp), dtype),
            grid_spec=grid_spec,
            compiler_params=pltpu.CompilerParams(
                # Single TC: sharding the batch axis on v7x would duplicate the
                # resident table's DMA + VMEM footprint on both cores.
                dimension_semantics=("arbitrary",),
                vmem_limit_bytes=vmem_limit,
            ),
        )(labels_2d, table_p)
        out = out[:B, :H]
    else:
        # Table too large to keep resident (or forced): DMA only labelled rows.
        tbf = 8
        b_padf = _round_up(B, tbf)
        labels_p = labels
        if b_padf != B:
            labels_p = jnp.pad(labels_p, (0, b_padf - B))

        grid_spec = pltpu.PrefetchScalarGridSpec(
            num_scalar_prefetch=1,
            grid=(b_padf // tbf,),
            in_specs=[pl.BlockSpec(memory_space=pl.ANY)],
            out_specs=pl.BlockSpec((tbf, H), lambda i, lbl: (i, 0)),
            scratch_shapes=[pltpu.SemaphoreType.DMA((tbf,))],
        )
        out = pl.pallas_call(
            _embed_rowdma_kernel,
            out_shape=jax.ShapeDtypeStruct((b_padf, H), dtype),
            grid_spec=grid_spec,
            compiler_params=pltpu.CompilerParams(
                dimension_semantics=("parallel",),
                vmem_limit_bytes=int(min(32 << 20, int(0.9 * vmem_cap))),
            ),
        )(labels_p, embedding_table)
        out = out[:B]

    # torch: embedding_table(labels).unsqueeze(1) -> (B, 1, H); reshape is free.
    return out.reshape(B, 1, H)


class LabelEmbedder:
    """JAX/Pallas port of the PyTorch LabelEmbedder."""

    def __init__(self, num_classes, hidden_size, dropout_prob, *, param_key):
        use_cfg_embedding = int(dropout_prob > 0)
        self.num_classes = num_classes
        self.hidden_size = hidden_size
        self.dropout_prob = dropout_prob
        # nn.Embedding default init ~ N(0, 1).
        self.embedding_table = jax.random.normal(
            param_key, (num_classes + use_cfg_embedding, hidden_size), jnp.float32)

    def token_drop(self, labels, force_drop_ids=None, *, drop_key=None):
        if force_drop_ids is None:
            drop_ids = jax.random.uniform(drop_key, (labels.shape[0],)) < self.dropout_prob
        else:
            drop_ids = force_drop_ids == 1
        return jnp.where(drop_ids, self.num_classes, labels)

    def __call__(self, labels, train, force_drop_ids=None, *, drop_key=None):
        use_dropout = self.dropout_prob > 0
        if force_drop_ids is not None and not use_dropout:
            # PyTorch would index out of bounds here (no CFG row in the table).
            raise ValueError("force_drop_ids requires dropout_prob > 0 (no CFG embedding row).")
        if (train and use_dropout) or (force_drop_ids is not None):
            labels = self.token_drop(labels, force_drop_ids, drop_key=drop_key)
        # Embedding lookup + unsqueeze(1) -> (B, 1, H), done in the Pallas kernel.
        return label_embed_pallas(labels, self.embedding_table)


if __name__ == "__main__":
    key = jax.random.PRNGKey(0)
    k_param, k_labels, k_drop = jax.random.split(key, 3)

    num_classes = 10
    hidden_size = 32
    dropout_prob = 0.1
    batch = 4

    embedder = LabelEmbedder(num_classes, hidden_size, dropout_prob, param_key=k_param)
    labels = jax.random.randint(k_labels, (batch,), 0, num_classes, dtype=jnp.int32)

    # Eval path (no dropout) -- resident-table one-hot MXU gather.
    out_eval = jax.block_until_ready(embedder(labels, train=False))

    # Train path with forced CFG drop on samples 0 and 3.
    force_drop_ids = jnp.array([1, 0, 0, 1], dtype=jnp.int32)
    out_train = jax.block_until_ready(
        embedder(labels, train=True, force_drop_ids=force_drop_ids, drop_key=k_drop))

    # HBM row-gather fallback path, exercised explicitly.
    out_rowdma = jax.block_until_ready(
        label_embed_pallas(labels, embedder.embedding_table, force_path="rowdma"))

    # References (plain jnp.take gather).
    ref_eval = jnp.take(embedder.embedding_table, labels, axis=0)[:, None, :]
    dropped = jnp.where(force_drop_ids == 1, num_classes, labels)
    ref_train = jnp.take(embedder.embedding_table, dropped, axis=0)[:, None, :]

    assert out_eval.shape == (batch, 1, hidden_size)
    assert out_train.shape == (batch, 1, hidden_size)
    assert out_rowdma.shape == (batch, 1, hidden_size)
    assert jnp.allclose(out_eval, ref_eval, rtol=1e-6, atol=1e-6)
    assert jnp.allclose(out_train, ref_train, rtol=1e-6, atol=1e-6)
    assert jnp.allclose(out_rowdma, ref_eval)

    print("KERNEL_OK")
</pallas_src>

<mosaic_0001>
module attributes {stable_mosaic.version = 11 : i64} {
  func.func @_embed_onehot_kernel(%arg0: i32, %arg1: memref<8x1xi32, #tpu.memory_space<vmem>>, %arg2: memref<11x128xf32, #tpu.memory_space<vmem>>, %arg3: memref<8x128xf32, #tpu.memory_space<vmem>>) attributes {dimension_semantics = [#tpu.dimension_semantics<arbitrary>], iteration_bounds = array<i64: 1>, scalar_prefetch = 0 : i64, scratch_operands = 0 : i64, tpu.core_type = #tpu.core_type<tc>, window_params = [{transform_indices = @transform_0, window_bounds = array<i64: 8, 1>}, {pipeline_mode = #tpu.pipeline_mode<synchronous>, transform_indices = @transform_1, window_bounds = array<i64: 11, 128>}, {transform_indices = @transform_2, window_bounds = array<i64: 8, 128>}]} {
    %c0 = arith.constant 0 : index
    %c0_0 = arith.constant 0 : index
    %0 = vector.load %arg1[%c0, %c0_0] : memref<8x1xi32, #tpu.memory_space<vmem>>, vector<8x1xi32>
    %1 = tpu.iota {dimensions = array<i32: 1>} : vector<8x11xi32>
    %2 = vector.broadcast %0 : vector<8x1xi32> to vector<8x11xi32>
    %3 = arith.cmpi eq, %2, %1 : vector<8x11xi32>
    %c0_1 = arith.constant 0 : index
    %c0_2 = arith.constant 0 : index
    %4 = vector.load %arg2[%c0_1, %c0_2] : memref<11x128xf32, #tpu.memory_space<vmem>>, vector<11x128xf32>
    %5 = arith.extui %3 : vector<8x11xi1> to vector<8x11xi32>
    %6 = arith.sitofp %5 : vector<8x11xi32> to vector<8x11xf32>
    %7 = arith.truncf %6 : vector<8x11xf32> to vector<8x11xbf16>
    %8 = arith.truncf %4 : vector<11x128xf32> to vector<11x128xbf16>
    %9 = arith.extf %8 : vector<11x128xbf16> to vector<11x128xf32>
    %10 = arith.subf %4, %9 : vector<11x128xf32>
    %11 = arith.truncf %10 : vector<11x128xf32> to vector<11x128xbf16>
    %12 = arith.extf %11 : vector<11x128xbf16> to vector<11x128xf32>
    %13 = arith.subf %10, %12 : vector<11x128xf32>
    %14 = arith.truncf %13 : vector<11x128xf32> to vector<11x128xbf16>
    %cst = arith.constant dense<0.000000e+00> : vector<8x128xf32>
    %15 = tpu.matmul %7, %8, %cst {dimension_numbers = #tpu.dot_dimension_numbers<[1], [0], [0], [1], [0, 0, 1, 1], [], []>} : vector<8x11xbf16>, vector<11x128xbf16>, vector<8x128xf32> -> vector<8x128xf32>
    %cst_3 = arith.constant dense<0.000000e+00> : vector<8x128xf32>
    %16 = tpu.matmul %7, %11, %cst_3 {dimension_numbers = #tpu.dot_dimension_numbers<[1], [0], [0], [1], [0, 0, 1, 1], [], []>} : vector<8x11xbf16>, vector<11x128xbf16>, vector<8x128xf32> -> vector<8x128xf32>
    %17 = arith.addf %15, %16 : vector<8x128xf32>
    %cst_4 = arith.constant dense<0.000000e+00> : vector<8x128xf32>
    %18 = tpu.matmul %7, %14, %cst_4 {dimension_numbers = #tpu.dot_dimension_numbers<[1], [0], [0], [1], [0, 0, 1, 1], [], []>} : vector<8x11xbf16>, vector<11x128xbf16>, vector<8x128xf32> -> vector<8x128xf32>
    %19 = arith.addf %17, %18 : vector<8x128xf32>
    %c0_5 = arith.constant 0 : index
    %c0_6 = arith.constant 0 : index
    %20 = vector.load %arg3[%c0_5, %c0_6] : memref<8x128xf32, #tpu.memory_space<vmem>>, vector<8x128xf32>
    tpu.vector_store %arg3[%c0_5, %c0_6], %19 {strides = array<i32>} : memref<8x128xf32, #tpu.memory_space<vmem>>, vector<8x128xf32>,
    return
  }
  func.func @transform_0(%arg0: i32) -> (i32, i32) {
    %c0_i32 = arith.constant 0 : i32
    %c0_i32_0 = arith.constant 0 : i32
    return %arg0, %c0_i32 : i32, i32
  }
  func.func @transform_1(%arg0: i32) -> (i32, i32) {
    %c0_i32 = arith.constant 0 : i32
    %c0_i32_0 = arith.constant 0 : i32
    %c0_i32_1 = arith.constant 0 : i32
    return %c0_i32, %c0_i32_0 : i32, i32
  }
  func.func @transform_2(%arg0: i32) -> (i32, i32) {
    %c0_i32 = arith.constant 0 : i32
    %c0_i32_0 = arith.constant 0 : i32
    return %arg0, %c0_i32 : i32, i32
  }
}

</mosaic_0001>

<bundles_post_ra>
// kernel: label_embed_pallas.1
= control target key start
LH: loop header
LB: loop body
LE: loop exit
PB: predicated region body
PF: predicated region fallthrough
CT: control target
= control target key end

     0   :  { %vm39_vm0 = vcmask 1044480   ;;  %v216_v0 = vmov 0   ;;  %v217_v2 = vmov 0.0   ;;  %vm40_vm1 = vcmask 1045504   ;;  %s250_s0 = inlined_call_operand.vmem [shape: s32[8,1], index: 0, kind: input, shape index: {}]   ;;  %s251_s1 = inlined_call_operand.vmem [shape: f32[11,128], index: 1, kind: input, shape index: {}]   ;;  %s252_s2 = inlined_call_operand.vmem [shape: f32[8,128], index: 2, kind: output, shape index: {}]  }
   0x1   :  { %215 = vset.pattern.permute.xlu0 %v216_v0  ;;  %v12_v1 = vld [vmem:[%s250_s0] sm:$0xff]  ;;  %194 = vmatprep.subr.bf16.mxu0 %v217_v2  ;;  %v20_v4 = vld [vmem:[%s251_s1 + $0x8] sm:$0x7]  ;;  %v218_v6 = vmov 65535   ;;  %vm219_vm2 = vmmov 0   ;;  %v13_v22 = vlaneseq  ;;  %vm35_vm4 = vcmask 89088  }
   0x2   :  { %v19_v3 = vld [vmem:[%s251_s1] sm:$0xff]  ;;  %16 = vperm.xlu0 %215, %v12_v1   ;;  %188 = vmatprep.subr.bf16.mxu1 %v217_v2  ;;  %v41_v7 = vsel %vm39_vm0, 4294967295, %v218_v6 }
   0x3   :  { %v24_v5 = vpack.c.bf16 %v20_v4, %v19_v3  ;;  %v42_v8 = vsel %vm40_vm1, %v41_v7, 0  ;;  %190 = vmatprep.mubr.msk.bf16.mxu1 %vm219_vm2, %v217_v2  ;;  %196 = vmatprep.mubr.msk.bf16.mxu0 %vm219_vm2, %v217_v2  ;;  %v14_v23 = vand.u32 127, %v13_v22 }
   0x5   :  { %v25_v9 = vunpack.c.l.bf16 %v24_v5  ;;  %v26_v10 = vunpack.c.h.bf16 %v24_v5  ;;  %v87_v11 = vand.u32 %v42_v8, %v24_v5 }
   0x7   :  { %v27_v12 = vsub.f32 %v19_v3, %v25_v9  ;;  %v28_v13 = vsub.f32 %v20_v4, %v26_v10  ;;  %195 = vmatpush3.bf16.msra.mxu0 %v87_v11 }
   0x8   :  { %200 = vmatprep.subr.bf16.mxu0 %v217_v2 }
   0x9   :  { %v29_v14 = vpack.c.bf16 %v28_v13, %v27_v12 }
   0xb   :  { %v30_v15 = vunpack.c.l.bf16 %v29_v14  ;;  %v31_v16 = vunpack.c.h.bf16 %v29_v14  ;;  %v44_v17 = vand.u32 %v42_v8, %v29_v14 }
   0xd   :  { %v32_v18 = vsub.f32 %v27_v12, %v30_v15  ;;  %v33_v19 = vsub.f32 %v28_v13, %v31_v16  ;;  %189 = vmatpush3.bf16.msra.mxu1 %v44_v17 }
   0xf   :  { %v34_v20 = vpack.c.bf16 %v33_v19, %v32_v18 }
  0x11   :  { %v130_v21 = vand.u32 %v42_v8, %v34_v20 }
  0x81   :  { %v17_v24 = vpop.permute.xlu0 %16 }
  0x82   :  { %vm18_vm3 = vcmp.eq.s32.totalorder %v17_v24, %v14_v23 }
  0x83   :  { %v178_v25 = vsel %vm18_vm3, 1.0, %v217_v2 }
  0x84   :  { %v23_v26 = vpack.c.bf16 %v178_v25, %v178_v25 }
  0x86   :  { %191 = vmatmul.mubr.msk.bf16.vlgmr.msra.gmra.mrb[0].mxu1 %vm35_vm4, %v23_v26  ;;  %197 = vmatmul.mubr.msk.bf16.vlgmr.msra.gmra.mrb[0].mxu0 %vm35_vm4, %v23_v26 }
  0x87   :  { %201 = vmatpush3.bf16.msra.mxu0 %v130_v21  ;;  %202 = vmatprep.mubr.msk.bf16.mxu0 %vm219_vm2, %v217_v2 }
  0x92   :  { %203 = vmatmul.mubr.msk.bf16.vlgmr.msra.gmra.mrb[0].mxu0 %vm35_vm4, %v23_v26 }
 0x159   :  { %v80_v27 = vpop.f32.mrb[0].mxu1 }
 0x15a   :  { %v192_v28 = vpop.f32.mrb[1].mxu1 }
 0x15b   :  { %v83_v29 = vpop.f32.mrb[2].mxu1 }
 0x15c   :  { %v193_v30 = vpop.f32.mrb[3].mxu1 }
 0x165   :  { %v166_v31 = vpop.f32.mrb[0].mxu0 }
 0x166   :  { %v206_v32 = vadd.f32 %v166_v31, %v80_v27  ;;  %v204_v33 = vpop.f32.mrb[1].mxu0 }
 0x167   :  { %v169_v34 = vpop.f32.mrb[2].mxu0 }
 0x168   :  { %173 = vst [vmem:[%s252_s2] sm:$0xff] %v206_v32  ;;  %v205_v35 = vpop.f32.mrb[3].mxu0 }

</bundles_post_ra>
